<compile_context>
chip_gen: v6e
topology: v6e:2x2x1
jax: 0.10.0
libtpu: 0.0.40
codegen_flags: <defaults>
</compile_context>

<pallas_src>
import functools

import jax
import jax.numpy as jnp
from jax.experimental import pallas as pl
from jax.experimental.pallas import tpu as pltpu


def _round_up(x, m):
    return (x + m - 1) // m * m


def _tiling(n, row_tile):
    """Pick a row tile TM (multiple of 8) and padded node count Np (mult of TM)."""
    n8 = _round_up(n, 8)
    tm = _round_up(min(row_tile, n8), 8)
    np_ = _round_up(n8, tm)
    return tm, np_


# ----------------------------------------------------------------------------
# Pallas kernel: one RGCN layer.
# Grid = (N/TM, num_rels); relation axis (innermost) is the reduction.
# Body: acc[TM, Dout] += A_r[TM, N] @ HW_r[N, Dout]; epilogue at r == R-1.
# ----------------------------------------------------------------------------
def _rgcn_layer_kernel(*refs, use_self_loop, apply_relu):
    if use_self_loop:
        a_ref, hw_ref, h_ref, wself_ref, bias_ref, o_ref, acc_ref = refs
    else:
        a_ref, hw_ref, bias_ref, o_ref, acc_ref = refs
        h_ref = wself_ref = None

    r = pl.program_id(1)

    @pl.when(r == 0)
    def _():
        acc_ref[...] = jnp.zeros_like(acc_ref)

    # bf16 x bf16 -> f32 accumulation on the MXU.
    acc_ref[...] += jnp.dot(a_ref[...], hw_ref[...],
                            preferred_element_type=jnp.float32)

    @pl.when(r == pl.num_programs(1) - 1)
    def _():
        out = acc_ref[...] + bias_ref[...]
        if use_self_loop:
            out = out + jnp.dot(h_ref[...], wself_ref[...],
                                preferred_element_type=jnp.float32)
        if apply_relu:
            out = jnp.maximum(out, 0.0)
        o_ref[...] = out.astype(o_ref.dtype)


def rgcn_layer(A_pad, h, coeff, bases, w_self, bias, *, n_nodes, row_tile,
               use_self_loop=True, apply_relu=True):
    """One relational graph conv layer.

    A_pad : [R, Np, Np] bfloat16 padded dense normalized adjacency.
    h     : [N, Din] f32 node features.
    coeff : [R, nb], bases : [nb, Din, Dout], w_self : [Din, Dout], bias : [1, Dout].
    """
    R, Np, _ = A_pad.shape
    N = n_nodes
    Din = h.shape[1]
    Dout = bases.shape[2]
    TM = row_tile
    assert Np % TM == 0

    # Hoisted feature transform (basis decomposition): only num_bases matmuls.
    hb = jnp.einsum('nd,bdo->bno', h, bases)            # [nb, N, Dout] f32
    hw = jnp.einsum('rb,bno->rno', coeff, hb)           # [R,  N, Dout] f32

    # Pad feature dims to a lane-dense multiple of 128; cast MXU inputs to bf16.
    Dp_in = _round_up(Din, 128)
    Dp_out = _round_up(Dout, 128)

    hw_p = jnp.pad(hw, ((0, 0), (0, Np - N), (0, Dp_out - Dout))).astype(jnp.bfloat16)
    b_p = jnp.pad(bias, ((0, 0), (0, Dp_out - Dout)))                  # f32
    if use_self_loop:
        h_p = jnp.pad(h, ((0, Np - N), (0, Dp_in - Din))).astype(jnp.bfloat16)
        ws_p = jnp.pad(w_self, ((0, Dp_in - Din), (0, Dp_out - Dout))).astype(jnp.bfloat16)

    grid = (Np // TM, R)

    # (optionally pipeline_mode=pl.Buffered(3) on A if the DMA is still exposed)
    in_specs = [
        pl.BlockSpec((None, TM, Np), lambda i, r: (r, i, 0)),        # A_r row tile
        pl.BlockSpec((None, Np, Dp_out), lambda i, r: (r, 0, 0)),    # HW_r
    ]
    args = [A_pad, hw_p]
    if use_self_loop:
        in_specs += [
            pl.BlockSpec((TM, Dp_in), lambda i, r: (i, 0)),          # H row tile
            pl.BlockSpec((Dp_in, Dp_out), lambda i, r: (0, 0)),      # W_self (resident)
        ]
        args += [h_p, ws_p]
    in_specs.append(pl.BlockSpec((1, Dp_out), lambda i, r: (0, 0)))  # bias (resident)
    args.append(b_p)

    kernel = functools.partial(_rgcn_layer_kernel,
                               use_self_loop=use_self_loop,
                               apply_relu=apply_relu)

    # VMEM budget: 2x(A tile) + 2x(HW tile) + 2x(out tile) + acc + residents.
    vmem = (2 * TM * Np * 2 + 2 * Np * Dp_out * 2
            + 2 * TM * Dp_out * 4 + TM * Dp_out * 4 + 2 * Dp_out * 4)
    if use_self_loop:
        vmem += 2 * TM * Dp_in * 2 + 2 * Dp_in * Dp_out * 2
    vmem_limit = min(max(int(vmem * 1.5), 32 * 1024 * 1024), 100 * 1024 * 1024)

    out = pl.pallas_call(
        kernel,
        out_shape=jax.ShapeDtypeStruct((Np, Dp_out), jnp.float32),
        grid_spec=pltpu.PrefetchScalarGridSpec(
            num_scalar_prefetch=0,
            grid=grid,
            in_specs=in_specs,
            out_specs=pl.BlockSpec((TM, Dp_out), lambda i, r: (i, 0)),
            scratch_shapes=[pltpu.VMEM((TM, Dp_out), jnp.float32)],
        ),
        compiler_params=pltpu.CompilerParams(
            dimension_semantics=("parallel", "arbitrary"),  # rows || , rels = reduction
            vmem_limit_bytes=vmem_limit),
    )(*args)

    return out[:N, :Dout]


# ----------------------------------------------------------------------------
# BaseRGCN equivalent: builds the layer stack and loops forward(g, h, r, norm).
# ----------------------------------------------------------------------------
class BaseRGCNPallas:
    def __init__(self, num_nodes, h_dim, out_dim, num_rels, num_bases,
                 num_hidden_layers=1, dropout=0, use_self_loop=False,
                 seed=0, row_tile=128):
        self.num_nodes = num_nodes
        self.h_dim = h_dim
        self.out_dim = out_dim
        self.num_rels = num_rels
        self.num_bases = None if num_bases < 0 else num_bases
        self.num_hidden_layers = num_hidden_layers
        self.dropout = dropout                 # 0 -> no-op
        self.use_self_loop = use_self_loop
        self.row_tile = row_tile
        self._key = jax.random.PRNGKey(seed)
        self.build_model()

    def _next(self):
        self._key, k = jax.random.split(self._key)
        return k

    def _make_layer(self, in_dim, out_dim):
        nb = self.num_bases if self.num_bases is not None else self.num_rels
        scale_v = (2.0 / (in_dim + out_dim)) ** 0.5
        bases = scale_v * jax.random.normal(self._next(), (nb, in_dim, out_dim),
                                            jnp.float32)
        coeff = jax.random.normal(self._next(), (self.num_rels, nb), jnp.float32)
        w_self = scale_v * jax.random.normal(self._next(), (in_dim, out_dim),
                                             jnp.float32)
        bias = jnp.zeros((1, out_dim), jnp.float32)
        return dict(bases=bases, coeff=coeff, w_self=w_self, bias=bias)

    def build_model(self):
        # Input / output layers are None in the base class; hidden layers are
        # basis-decomposition relational graph convs (as in EntityClassify).
        self.layers = [self._make_layer(self.h_dim, self.h_dim)
                       for _ in range(self.num_hidden_layers)]

    def forward(self, g, h, r, norm):
        """g: (src, dst) int arrays; r: edge relation types; norm: per-edge norm."""
        src, dst = g
        N, R = self.num_nodes, self.num_rels
        # Dense normalized adjacency per relation:  A[rel, dst, src] = norm.
        A = jnp.zeros((R, N, N), jnp.float32).at[r, dst, src].add(norm)
        # Pad + cast once (A is reused by every layer).
        TM, Np = _tiling(N, self.row_tile)
        A = jnp.pad(A, ((0, 0), (0, Np - N), (0, Np - N))).astype(jnp.bfloat16)

        for layer in self.layers:
            h = rgcn_layer(A, h, layer['coeff'], layer['bases'],
                           layer['w_self'], layer['bias'],
                           n_nodes=N, row_tile=TM,
                           use_self_loop=self.use_self_loop, apply_relu=True)
        return h


# ----------------------------------------------------------------------------
# Pure-JAX reference (same bf16-input / f32-accumulate numerics) for checking.
# ----------------------------------------------------------------------------
def reference_forward(model, g, h, r, norm):
    src, dst = g
    N, R = model.num_nodes, model.num_rels
    A = jnp.zeros((R, N, N), jnp.float32).at[r, dst, src].add(norm)
    A16 = A.astype(jnp.bfloat16)
    for layer in model.layers:
        hb = jnp.einsum('nd,bdo->bno', h, layer['bases'])
        hw = jnp.einsum('rb,bno->rno', layer['coeff'], hb).astype(jnp.bfloat16)
        msg = jnp.einsum('rij,rjd->id', A16, hw,
                         preferred_element_type=jnp.float32)
        out = msg + layer['bias']
        if model.use_self_loop:
            out = out + jnp.dot(h.astype(jnp.bfloat16),
                                layer['w_self'].astype(jnp.bfloat16),
                                preferred_element_type=jnp.float32)
        h = jnp.maximum(out, 0.0)
    return h


if __name__ == "__main__":
    num_nodes, h_dim, out_dim = 64, 32, 32
    num_rels, num_bases = 4, 2
    num_edges = 256

    key = jax.random.PRNGKey(0)
    k1, k2, k3, k4, k5 = jax.random.split(key, 5)

    h0 = jax.random.normal(k1, (num_nodes, h_dim), jnp.float32)
    src = jax.random.randint(k2, (num_edges,), 0, num_nodes)
    dst = jax.random.randint(k3, (num_edges,), 0, num_nodes)
    rel = jax.random.randint(k4, (num_edges,), 0, num_rels)
    norm = jax.random.uniform(k5, (num_edges,), jnp.float32, 0.1, 1.0)

    # Main config: self-loop enabled, 2 hidden layers.
    model = BaseRGCNPallas(num_nodes, h_dim, out_dim, num_rels, num_bases,
                           num_hidden_layers=2, dropout=0,
                           use_self_loop=True, seed=0)
    out = jax.block_until_ready(model.forward((src, dst), h0, rel, norm))
    ref = reference_forward(model, (src, dst), h0, rel, norm)
    assert out.shape == (num_nodes, h_dim)
    assert jnp.allclose(out, ref, atol=1e-2, rtol=1e-2), "mismatch vs reference"

    # Also exercise the no-self-loop kernel variant (H / W_self dropped).
    model2 = BaseRGCNPallas(num_nodes, h_dim, out_dim, num_rels, num_bases,
                            num_hidden_layers=1, dropout=0,
                            use_self_loop=False, seed=1)
    out2 = jax.block_until_ready(model2.forward((src, dst), h0, rel, norm))
    ref2 = reference_forward(model2, (src, dst), h0, rel, norm)
    assert jnp.allclose(out2, ref2, atol=1e-2, rtol=1e-2), "mismatch (no self-loop)"

    print("KERNEL_OK")
</pallas_src>

<mosaic_0001>
module attributes {stable_mosaic.version = 11 : i64} {
  func.func @_rgcn_layer_kernel(%arg0: i32, %arg1: i32, %arg2: memref<1x64x64xbf16, #tpu.memory_space<vmem>>, %arg3: memref<1x64x128xbf16, #tpu.memory_space<vmem>>, %arg4: memref<64x128xbf16, #tpu.memory_space<vmem>>, %arg5: memref<128x128xbf16, #tpu.memory_space<vmem>>, %arg6: memref<1x128xf32, #tpu.memory_space<vmem>>, %arg7: memref<64x128xf32, #tpu.memory_space<vmem>>, %arg8: memref<64x128xf32, #tpu.memory_space<vmem>>) attributes {dimension_semantics = [#tpu.dimension_semantics<parallel>, #tpu.dimension_semantics<arbitrary>], iteration_bounds = array<i64: 1, 4>, scalar_prefetch = 0 : i64, scratch_operands = 1 : i64, tpu.core_type = #tpu.core_type<tc>, window_params = [{transform_indices = @transform_0, window_bounds = array<i64: 1, 64, 64>}, {transform_indices = @transform_1, window_bounds = array<i64: 1, 64, 128>}, {transform_indices = @transform_2, window_bounds = array<i64: 64, 128>}, {pipeline_mode = #tpu.pipeline_mode<synchronous>, transform_indices = @transform_3, window_bounds = array<i64: 128, 128>}, {pipeline_mode = #tpu.pipeline_mode<synchronous>, transform_indices = @transform_4, window_bounds = array<i64: 1, 128>}, {transform_indices = @transform_5, window_bounds = array<i64: 64, 128>}]} {
    %c0_i32 = arith.constant 0 : i32
    %0 = arith.cmpi eq, %arg1, %c0_i32 : i32
    %1 = arith.extui %0 : i1 to i32
    %c0_i32_0 = arith.constant 0 : i32
    %2 = arith.cmpi ne, %1, %c0_i32_0 : i32
    scf.if %2 {
      %cst_11 = arith.constant 0.000000e+00 : f32
      %14 = vector.broadcast %cst_11 : f32 to vector<64x128xf32>
      %c0_12 = arith.constant 0 : index
      %c0_13 = arith.constant 0 : index
      %15 = vector.load %arg8[%c0_12, %c0_13] : memref<64x128xf32, #tpu.memory_space<vmem>>, vector<64x128xf32>
      tpu.vector_store %arg8[%c0_12, %c0_13], %14 {strides = array<i32>} : memref<64x128xf32, #tpu.memory_space<vmem>>, vector<64x128xf32>,
    } else {
    }
    %c0 = arith.constant 0 : index
    %c0_1 = arith.constant 0 : index
    %3 = vector.load %arg8[%c0, %c0_1] : memref<64x128xf32, #tpu.memory_space<vmem>>, vector<64x128xf32>
    %c0_2 = arith.constant 0 : index
    %c0_3 = arith.constant 0 : index
    %c0_4 = arith.constant 0 : index
    %4 = vector.load %arg2[%c0_2, %c0_3, %c0_4] : memref<1x64x64xbf16, #tpu.memory_space<vmem>>, vector<1x64x64xbf16>
    %5 = vector.shape_cast %4 : vector<1x64x64xbf16> to vector<64x64xbf16>
    %c0_5 = arith.constant 0 : index
    %c0_6 = arith.constant 0 : index
    %c0_7 = arith.constant 0 : index
    %6 = vector.load %arg3[%c0_5, %c0_6, %c0_7] : memref<1x64x128xbf16, #tpu.memory_space<vmem>>, vector<1x64x128xbf16>
    %7 = vector.shape_cast %6 : vector<1x64x128xbf16> to vector<64x128xbf16>
    %cst = arith.constant dense<0.000000e+00> : vector<64x128xf32>
    %8 = tpu.matmul %5, %7, %cst {dimension_numbers = #tpu.dot_dimension_numbers<[1], [0], [0], [1], [0, 0, 1, 1], [], []>} : vector<64x64xbf16>, vector<64x128xbf16>, vector<64x128xf32> -> vector<64x128xf32>
    %9 = arith.addf %3, %8 : vector<64x128xf32>
    %c0_8 = arith.constant 0 : index
    %c0_9 = arith.constant 0 : index
    %10 = vector.load %arg8[%c0_8, %c0_9] : memref<64x128xf32, #tpu.memory_space<vmem>>, vector<64x128xf32>
    tpu.vector_store %arg8[%c0_8, %c0_9], %9 {strides = array<i32>} : memref<64x128xf32, #tpu.memory_space<vmem>>, vector<64x128xf32>,
    %c3_i32 = arith.constant 3 : i32
    %11 = arith.cmpi eq, %arg1, %c3_i32 : i32
    %12 = arith.extui %11 : i1 to i32
    %c0_i32_10 = arith.constant 0 : i32
    %13 = arith.cmpi ne, %12, %c0_i32_10 : i32
    scf.if %13 {
      %c0_11 = arith.constant 0 : index
      %c0_12 = arith.constant 0 : index
      %14 = vector.load %arg8[%c0_11, %c0_12] : memref<64x128xf32, #tpu.memory_space<vmem>>, vector<64x128xf32>
      %c0_13 = arith.constant 0 : index
      %c0_14 = arith.constant 0 : index
      %15 = vector.load %arg6[%c0_13, %c0_14] : memref<1x128xf32, #tpu.memory_space<vmem>>, vector<1x128xf32>
      %16 = vector.broadcast %15 : vector<1x128xf32> to vector<64x128xf32>
      %17 = arith.addf %14, %16 : vector<64x128xf32>
      %c0_15 = arith.constant 0 : index
      %c0_16 = arith.constant 0 : index
      %18 = vector.load %arg4[%c0_15, %c0_16] : memref<64x128xbf16, #tpu.memory_space<vmem>>, vector<64x128xbf16>
      %c0_17 = arith.constant 0 : index
      %c0_18 = arith.constant 0 : index
      %19 = vector.load %arg5[%c0_17, %c0_18] : memref<128x128xbf16, #tpu.memory_space<vmem>>, vector<128x128xbf16>
      %cst_19 = arith.constant dense<0.000000e+00> : vector<64x128xf32>
      %20 = tpu.matmul %18, %19, %cst_19 {dimension_numbers = #tpu.dot_dimension_numbers<[1], [0], [0], [1], [0, 0, 1, 1], [], []>} : vector<64x128xbf16>, vector<128x128xbf16>, vector<64x128xf32> -> vector<64x128xf32>
      %21 = arith.addf %17, %20 : vector<64x128xf32>
      %cst_20 = arith.constant 0.000000e+00 : f32
      %22 = vector.broadcast %cst_20 : f32 to vector<64x128xf32>
      %23 = arith.maximumf %21, %22 : vector<64x128xf32>
      %c0_21 = arith.constant 0 : index
      %c0_22 = arith.constant 0 : index
      %24 = vector.load %arg7[%c0_21, %c0_22] : memref<64x128xf32, #tpu.memory_space<vmem>>, vector<64x128xf32>
      tpu.vector_store %arg7[%c0_21, %c0_22], %23 {strides = array<i32>} : memref<64x128xf32, #tpu.memory_space<vmem>>, vector<64x128xf32>,
    } else {
    }
    return
  }
  func.func @transform_0(%arg0: i32, %arg1: i32) -> (i32, i32, i32) {
    %c0_i32 = arith.constant 0 : i32
    %c0_i32_0 = arith.constant 0 : i32
    return %arg1, %arg0, %c0_i32 : i32, i32, i32
  }
  func.func @transform_1(%arg0: i32, %arg1: i32) -> (i32, i32, i32) {
    %c0_i32 = arith.constant 0 : i32
    %c0_i32_0 = arith.constant 0 : i32
    %c0_i32_1 = arith.constant 0 : i32
    return %arg1, %c0_i32, %c0_i32_0 : i32, i32, i32
  }
  func.func @transform_2(%arg0: i32, %arg1: i32) -> (i32, i32) {
    %c0_i32 = arith.constant 0 : i32
    %c0_i32_0 = arith.constant 0 : i32
    return %arg0, %c0_i32 : i32, i32
  }
  func.func @transform_3(%arg0: i32, %arg1: i32) -> (i32, i32) {
    %c0_i32 = arith.constant 0 : i32
    %c0_i32_0 = arith.constant 0 : i32
    %c0_i32_1 = arith.constant 0 : i32
    return %c0_i32, %c0_i32_0 : i32, i32
  }
  func.func @transform_4(%arg0: i32, %arg1: i32) -> (i32, i32) {
    %c0_i32 = arith.constant 0 : i32
    %c0_i32_0 = arith.constant 0 : i32
    %c0_i32_1 = arith.constant 0 : i32
    return %c0_i32, %c0_i32_0 : i32, i32
  }
  func.func @transform_5(%arg0: i32, %arg1: i32) -> (i32, i32) {
    %c0_i32 = arith.constant 0 : i32
    %c0_i32_0 = arith.constant 0 : i32
    return %arg0, %c0_i32 : i32, i32
  }
}

</mosaic_0001>

<bundles_post_ra>
// kernel: tpu_custom_call.1
= control target key start
LH: loop header
LB: loop body
LE: loop exit
PB: predicated region body
PF: predicated region fallthrough
CT: control target
= control target key end

     0   :  { %s1522_s0 = inlined_call_operand.hbm [shape: bf16[4,64,64], index: 0, kind: input, shape index: {}]   ;;  %s1523_s1 = inlined_call_operand.hbm [shape: bf16[4,64,128], index: 1, kind: input, shape index: {}]   ;;  %s1524_s2 = inlined_call_operand.hbm [shape: bf16[64,128], index: 2, kind: input, shape index: {}]   ;;  %s1525_s3 = inlined_call_operand.hbm [shape: bf16[128,128], index: 3, kind: input, shape index: {}]   ;;  %s1526_s4 = inlined_call_operand.vmem [shape: f32[1,128], index: 4, kind: input, shape index: {}]   ;;  %s1527_s5 = inlined_call_operand.hbm [shape: f32[64,128], index: 5, kind: output, shape index: {}]  }
   0x1   :  { %1532 = sst [smem:[#allocation17_spill]] %s1522_s0 }
   0x2   :  { %10 = vsyncpa [#allocation4], 0 }
   0x3   :  { %12 = vsyncpa [#allocation4 + $0x1], 0 }
   0x4   :  { %13 = vsyncpa [#allocation7], 0 }
   0x5   :  { %15 = vsyncpa [#allocation7 + $0x1], 0 }
   0x6   :  { %16 = vsyncpa [#allocation10], 0 }
   0x7   :  { %17 = vsyncpa [#allocation5], 0  ;;  %s1325_s18 = smov 0   ;;  %s1327_s19 = smov 0  }
   0x8   :  { %s1329_s20 = smov 0   ;;  %s1331_s21 = smov 0  }
   0x9   :  { %s1333_s22 = smov 0   ;;  %s1335_s23 = smov 0  }
   0xa LB: > { %s1354_s24 = sadd.s32 4294967295, %s1283_s23   ;;  %p57_p0 = scmp.ne.s32.totalorder %s1267_s19, %s1263_s18  ;;  %s1283_s23 = sphi %s1335_s23, %s23_s23   ;;  %s1279_s22 = sphi %s1333_s22, %s1544_s22   ;;  %s1275_s21 = sphi %s1331_s21, %s1543_s21   ;;  %s1271_s20 = sphi %s1329_s20, %s1542_s20   ;;  %s1267_s19 = sphi %s1327_s19, %s1541_s19   ;;  %s1263_s18 = sphi %s1325_s18, %s1540_s18  }
   0xb   : > { %p58_p1 = scmp.eq.s32.totalorder %s1354_s24, 0  ;;  %p840_p2 = scmp.ge.s32.totalorder %s1283_s23, 1 }
   0xc   : > { %p188_p3 = scmp.lt.s32.totalorder %s1283_s23, 5  ;;  %s1285_s27 = smov [#allocation8]  }
   0xd   : > { %p1362_p4 = por %p58_p1, %p57_p0  ;;  %s203_s28 = sshll.u32 %s1285_s27, 4  ;;  %s204_s28 = int_to_ptr.vmem [resolvable:$true] %s203_s28 }
   0xe   : > { %p1366_p5 = pnand %p840_p2, %p188_p3  ;;  %s1286_s30 = smov [#allocation9]  }
   0xf   : > { %s216_s6 = sshll.u32 %s1286_s30, 4  ;;  %s1096_s7 = scalar_lea.vmem %s204_s28, 512  ;;  %s217_s6 = int_to_ptr.vmem [resolvable:$true] %s216_s6 }
  0x10   : > { %p988_p6 = pneg %p1366_p5  ;;  %p1097_p9 = scmp.ne.s32.totalorder %s204_s28, %s1096_s7 }
  0x11   : > { %p1104_p12 = scmp.lt.s32.totalorder %s204_s28, %s204_s28  ;;  %p1105_p13 = scmp.lt.s32.totalorder %s1096_s7, %s1096_s7 }
  0x12   : > { %p1374_p7 = pnand %p988_p6, %p58_p1 }
  0x13   : > { %p1106_p0 = por %p1105_p13, %p1104_p12 }
  0x14   : > { %p1087_p8 = pneg %p1374_p7 }
  0x16   : > { %p1099_p10 = pnand %p1097_p9, %p1087_p8 }
  0x18   : > { %p1100_p11 = pneg %p1099_p10 }
  0x1a   : > { %p1107_p2 = pnand %p1106_p0, %p1100_p11 }
  0x1c   : > { %1110 = shalt.err (!%p1107_p2)
}
  0x1d   : > { %s1528_s8 = smov 64   ;;  %s1530_s9 = smov 4  }
  0x1e   : > { %991 = dma.hbm_to_vmem [thread:$0]  (!%p1374_p7), %s1524_s2, 512, %s204_s28, [#allocation7], %s1528_s8, %s1528_s8, %s1530_s9  }
  0x1f   : > { %s1122_s12 = scalar_lea.vmem %s217_s6, 1024  ;;  %p1130_p10 = scmp.lt.s32.totalorder %s217_s6, %s217_s6 }
  0x20   : > { %p1123_p3 = scmp.ne.s32.totalorder %s217_s6, %s1122_s12  ;;  %p1131_p11 = scmp.lt.s32.totalorder %s1122_s12, %s1122_s12 }
  0x22   : > { %p1125_p6 = pnand %p1123_p3, %p1087_p8  ;;  %p1132_p12 = por %p1131_p11, %p1130_p10 }
  0x24   : > { %p1126_p9 = pneg %p1125_p6 }
  0x26   : > { %p1133_p13 = pnand %p1132_p12, %p1126_p9 }
  0x28   : > { %1136 = shalt.err (!%p1133_p13)
}
  0x29   : > { %994 = dma.hbm_to_vmem [thread:$0]  (!%p1374_p7), %s1525_s3, 1024, %s217_s6, [#allocation10], %s1528_s8, %s1528_s8, %s1530_s9  }
  0x2a   : > { %s32_s15 = sadd.s32 1, %s1279_s22  ;;  %s44_s16 = sadd.s32 1, %s1271_s20 }
  0x2b   : > { %p33_p8 = scmp.ge.s32.totalorder %s32_s15, 4  ;;  %p51_p0 = scmp.ne.s32.totalorder %s1271_s20, %s1267_s19 }
  0x2c   : > { %p52_p2 = scmp.eq.s32.totalorder %s1283_s23, 0  ;;  %p1004_p3 = scmp.lt.s32.totalorder %s1283_s23, 4 }
  0x2d   : > { %s1546_s15 = smov (%p33_p8, %s32_s15), 0  ;;  %s233_s17 = sand.u32 1, %s1271_s20  }
  0x2e   : > { %p53_p6 = por %p52_p2, %p51_p0  ;;  %s39_s18 = ssub.s32 %s1279_s22, %s1546_s15 }
  0x2f   : > { %p42_p9 = scmp.eq.s32.totalorder %s39_s18, 0  ;;  %s844_s27 = sshll.u32 %s233_s17, 5 }
  0x30   : > { %s886_s28 = sshll.u32 %s1279_s22, 9  ;;  %s1536_s0 = sld [smem:[#allocation17_spill]] }
  0x31   : > { %s1415_s29 = scalar_select %p42_p9, %s1271_s20, %s44_s16  }
  0x32   : > { %s237_s10 = scalar_lea.vmem [#allocation3], %s844_s27  ;;  %p1422_p7 = pnand %p1004_p3, %p53_p6 }
  0x33   : > { %s246_s11 = sshll.u32 %s237_s10, 4  ;;  %s1429_s18 = scalar_lea.hbm %s1523_s1, %s886_s28  ;;  %s247_s11 = int_to_ptr.vmem [resolvable:$true] %s246_s11 }
  0x34   : > { %s260_s16 = scalar_lea.vmem [#allocation6], %s844_s27  ;;  %s234_s9 = scalar_lea.sflag [#allocation4], %s233_s17 }
  0x35   : > { %s267_s8 = sshll.u32 %s260_s16, 4  ;;  %p1139_p10 = pneg %p1422_p7  ;;  %s268_s8 = int_to_ptr.vmem [resolvable:$true] %s267_s8 }
  0x36   : > { %s245_s7 = scalar_lea.hbm %s1536_s0, %s886_s28  ;;  %s1150_s30 = scalar_lea.vmem %s247_s11, 512 }
  0x37   : > { %p1151_p11 = scmp.ne.s32.totalorder %s247_s11, %s1150_s30  ;;  %s1289_s6 = smov [#allocation3]  }
  0x38   : > { %s1155_s10 = sshll.u32 %s1289_s6, 4  ;;  %s1156_s10 = int_to_ptr.vmem [resolvable:$false] %s1155_s10 }
  0x39   : > { %p1153_p12 = pnand %p1151_p11, %p1139_p10  ;;  %s1157_s0 = scalar_lea.vmem %s1156_s10, 1024 }
  0x3a   : > { %p1158_p8 = scmp.lt.s32.totalorder %s247_s11, %s1156_s10  ;;  %p1159_p0 = scmp.lt.s32.totalorder %s1157_s0, %s1150_s30 }
  0x3b   : > { %p1154_p13 = pneg %p1153_p12 }
  0x3c   : > { %p1160_p2 = por %p1159_p0, %p1158_p8 }
  0x3e   : > { %p1161_p3 = pnand %p1160_p2, %p1154_p13 }
  0x40   : > { %1164 = shalt.err (!%p1161_p3)
}
  0x41   : > { %s1538_s17 = smov 4   ;;  %s1539_s27 = smov 64  }
  0x42   : > { %998 = dma.hbm_to_vmem [thread:$0]  (!%p1422_p7), %s245_s7, 512, %s247_s11, %s234_s9, %s1539_s27, %s1539_s27, %s1538_s17  }
  0x43   : > { %s256_s28 = sand.u32 1, %s1283_s23   ;;  %s1178_s14 = scalar_lea.vmem %s268_s8, 512 }
  0x44   : > { %s257_s13 = scalar_lea.sflag [#allocation7], %s256_s28  ;;  %p1179_p6 = scmp.ne.s32.totalorder %s268_s8, %s1178_s14 }
  0x45   : > { %s1290_s0 = smov [#allocation6]  }
  0x46   : > { %p1181_p9 = pnand %p1179_p6, %p1139_p10  ;;  %s1183_s16 = sshll.u32 %s1290_s0, 4  ;;  %s1184_s16 = int_to_ptr.vmem [resolvable:$false] %s1183_s16 }
  0x47   : > { %s1185_s30 = scalar_lea.vmem %s1184_s16, 1024  ;;  %p1186_p12 = scmp.lt.s32.totalorder %s268_s8, %s1184_s16 }
  0x48   : > { %p1182_p11 = pneg %p1181_p9  ;;  %p1187_p13 = scmp.lt.s32.totalorder %s1185_s30, %s1178_s14 }
  0x4a   : > { %p1188_p8 = por %p1187_p13, %p1186_p12 }
  0x4c   : > { %p1189_p0 = pnand %p1188_p8, %p1182_p11 }
  0x4e   : > { %1192 = shalt.err (!%p1189_p0)
}
  0x4f   : > { %1001 = dma.hbm_to_vmem [thread:$0]  (!%p1422_p7), %s1429_s18, 512, %s268_s8, %s257_s13, %s1539_s27, %s1539_s27, %s1538_s17  }
  0x50   : > { %279 = sbr.rel (%p1366_p5) target bundleno = 577 (0x241), region = 40  ;;  %s281_s9 = sand.u32 (!%p1366_p5), 1, %s1267_s19  }
  0x51   : > { %s851_s7 = sshll.u32 (!%p1366_p5), %s281_s9, 5  ;;  %s282_s11 = scalar_lea.sflag (!%p1366_p5), [#allocation4], %s281_s9 }
  0x52   : > { %s1454_s6 = scalar_lea.vmem (!%p1366_p5), [#allocation3], %s851_s7 }
  0x55   : > { %1242 = dma.done.wait (%p1362_p4), %s282_s11, 512  }
  0x56   : > { %1244 = vsyncadd (%p1362_p4), %s282_s11, 4294966784  ;;  %s290_s12 = sand.u32 1, %s1354_s24   ;;  %s1461_s8 = scalar_lea.vmem [#allocation6], %s851_s7 }
  0x57   : > { %s291_s10 = scalar_lea.sflag [#allocation7], %s290_s12 }
  0x58   : > { %1246 = dma.done.wait (%p1362_p4), %s291_s10, 512  }
  0x59   : > { %1248 = vsyncadd (%p1362_p4), %s291_s10, 4294966784 }
  0x5a   : > { %1250 = dma.done.wait (%p58_p1), [#allocation7], 512  }
  0x5b   : > { %1252 = vsyncadd (%p58_p1), [#allocation7], 4294966784 }
  0x5c   : > { %1254 = dma.done.wait (%p58_p1), [#allocation10], 1024  }
  0x5d   : > { %1256 = vsyncadd (%p58_p1), [#allocation10], 4294966272  ;;  %p855_p5 = scmp.ne.s32.totalorder %s1275_s21, 0 }
  0x5f   : > { %336 = sbr.rel (%p855_p5) target bundleno = 105 (0x69), region = 60 }
  0x64   : > { %v1291_v0 = vmov 0.0  }
  0x65   : > { %337 = vst [vmem:[#allocation2 + $0x30] sm:$0xff] %v1291_v0  ;;  %338 = vst [vmem:[#allocation2] sm:$0xff] %v1291_v0 }
  0x66   : > { %339 = vst [vmem:[#allocation2 + $0x18] sm:$0xff] %v1291_v0  ;;  %340 = vst [vmem:[#allocation2 + $0x10] sm:$0xff] %v1291_v0 }
  0x67   : > { %341 = vst [vmem:[#allocation2 + $0x8] sm:$0xff] %v1291_v0  ;;  %342 = vst [vmem:[#allocation2 + $0x20] sm:$0xff] %v1291_v0 }
  0x68   : > { %343 = vst [vmem:[#allocation2 + $0x28] sm:$0xff] %v1291_v0  ;;  %344 = vst [vmem:[#allocation2 + $0x38] sm:$0xff] %v1291_v0 }
  0x69 PF: > { %v1065_v1 = vld [vmem:[%s1461_s8 + $0x18] sm:$0xff]   ;;  %v1066_v2 = vld [vmem:[%s1461_s8 + $0x10] sm:$0xff]   ;;  %v1067_v3 = vld [vmem:[%s1461_s8 + $0x8] sm:$0xff]   ;;  %vm413_vm0 = vcmask 523264   ;;  %p868_p1 = scmp.ne.s32.totalorder %s1275_s21, 3 }
  0x6a   : > { %908 = vmatprep.subr.bf16.mxu0 %v1065_v1  ;;  %948 = vmatprep.subr.bf16.mxu1 %v1065_v1  ;;  %v1069_v4 = vld [vmem:[%s1454_s6] sm:$0xff]   ;;  %v1070_v5 = vld [vmem:[%s1454_s6 + $0x10] sm:$0xff]   ;;  %v1071_v7 = vld [vmem:[%s1454_s6 + $0x8] sm:$0xff]  }
  0x6b   : > { %909 = vmatpush3.bf16.msra.mxu0 %v1065_v1  ;;  %952 = vmatpush3.bf16.msra.mxu1 %v1065_v1  ;;  %v1068_v6 = vld [vmem:[%s1461_s8] sm:$0xff]   ;;  %v1072_v8 = vld [vmem:[%s1454_s6 + $0x18] sm:$0xff]  }
  0x6c   : > { %910 = vmatprep.subr.bf16.mxu0 %v1066_v2  ;;  %949 = vmatprep.subr.bf16.mxu1 %v1066_v2  ;;  %v345_v13 = vld [vmem:[#allocation2 + $0x30] sm:$0xff]  ;;  %v346_v25 = vld [vmem:[#allocation2] sm:$0xff] }
  0x6d   : > { %916 = vmatprep.mubr.msk.bf16.mxu0 %vm413_vm0, %v1069_v4  ;;  %920 = vmatprep.mubr.msk.bf16.mxu1 %vm413_vm0, %v1070_v5  ;;  %v347_v9 = vld [vmem:[#allocation2 + $0x18] sm:$0xff]  ;;  %v348_v19 = vld [vmem:[#allocation2 + $0x10] sm:$0xff] }
  0x6e   : > { %v349_v14 = vld [vmem:[#allocation2 + $0x8] sm:$0xff]  ;;  %v350_v26 = vld [vmem:[#allocation2 + $0x20] sm:$0xff] }
  0x6f   : > { %911 = vmatpush3.bf16.msra.mxu0 %v1066_v2  ;;  %953 = vmatpush3.bf16.msra.mxu1 %v1066_v2  ;;  %v351_v10 = vld [vmem:[#allocation2 + $0x28] sm:$0xff]  ;;  %v352_v20 = vld [vmem:[#allocation2 + $0x38] sm:$0xff] }
  0x70   : > { %912 = vmatprep.subr.bf16.mxu0 %v1067_v3  ;;  %950 = vmatprep.subr.bf16.mxu1 %v1067_v3 }
  0x73   : > { %913 = vmatpush3.bf16.msra.mxu0 %v1067_v3  ;;  %954 = vmatpush3.bf16.msra.mxu1 %v1067_v3 }
  0x74   : > { %914 = vmatprep.subr.bf16.mxu0 %v1068_v6  ;;  %951 = vmatprep.subr.bf16.mxu1 %v1068_v6 }
  0x77   : > { %915 = vmatpush3.bf16.msra.mxu0 %v1068_v6  ;;  %955 = vmatpush3.bf16.msra.mxu1 %v1068_v6 }
  0x7a   : > { %917 = vmatmul.mubr.msk.bf16.vlgmr.msra.gmra.mxu0 %vm413_vm0, %v1071_v7  ;;  %921 = vmatmul.mubr.msk.bf16.vlgmr.msra.gmra.mxu1 %vm413_vm0, %v1072_v8 }
 0x13a   : > { %v918_v11 = vpop.f32.mrf.mxu0  ;;  %v922_v12 = vpop.f32.mrf.mxu1 }
 0x13b   : > { %v493_v15 = vadd.f32 %v918_v11, %v347_v9  ;;  %v497_v16 = vadd.f32 %v922_v12, %v351_v10 }
 0x13c   : > { %v460_v17 = vpop.f32.mrf.mxu0  ;;  %v476_v18 = vpop.f32.mrf.mxu1 }
 0x13d   : > { %501 = vst [vmem:[#allocation2 + $0x18] sm:$0xff] %v493_v15  ;;  %505 = vst [vmem:[#allocation2 + $0x28] sm:$0xff] %v497_v16  ;;  %v491_v21 = vadd.f32 %v460_v17, %v345_v13  ;;  %v495_v22 = vadd.f32 %v476_v18, %v349_v14 }
 0x13e   : > { %v919_v23 = vpop.f32.mrf.mxu0  ;;  %v923_v24 = vpop.f32.mrf.mxu1 }
 0x13f   : > { %499 = vst [vmem:[#allocation2 + $0x30] sm:$0xff] %v491_v21  ;;  %503 = vst [vmem:[#allocation2 + $0x8] sm:$0xff] %v495_v22  ;;  %v494_v27 = vadd.f32 %v919_v23, %v348_v19  ;;  %v498_v28 = vadd.f32 %v923_v24, %v352_v20  ;;  %510 = sbr.rel (%p868_p1) target bundleno = 561 (0x231), region = 64 }
 0x140   : > { %v463_v29 = vpop.f32.mrf.mxu0  ;;  %v479_v30 = vpop.f32.mrf.mxu1 }
 0x141   : > { %502 = vst [vmem:[#allocation2 + $0x10] sm:$0xff] %v494_v27  ;;  %506 = vst [vmem:[#allocation2 + $0x38] sm:$0xff] %v498_v28  ;;  %v492_v31 = vadd.f32 %v463_v29, %v346_v25  ;;  %v496_v32 = vadd.f32 %v479_v30, %v350_v26 }
 0x143   : > { %500 = vst [vmem:[#allocation2] sm:$0xff] %v492_v31  ;;  %504 = vst [vmem:[#allocation2 + $0x20] sm:$0xff] %v496_v32 }
 0x144   : > { %v1073_v33 = vld [vmem:[#allocation9 + $0x38] sm:$0xff]   ;;  %v1074_v34 = vld [vmem:[#allocation9 + $0x30] sm:$0xff]   ;;  %v1075_v35 = vld [vmem:[#allocation9 + $0x28] sm:$0xff]  }
 0x145   : > { %924 = vmatprep.subr.bf16.mxu0 %v1073_v33  ;;  %956 = vmatprep.subr.bf16.mxu1 %v1073_v33  ;;  %v1076_v36 = vld [vmem:[#allocation9 + $0x20] sm:$0xff]   ;;  %v1082_v38 = vld [vmem:[#allocation8 + $0x10] sm:$0xff]   ;;  %v1077_v39 = vld [vmem:[#allocation9 + $0x18] sm:$0xff]  }
 0x146   : > { %925 = vmatpush3.bf16.msra.mxu0 %v1073_v33  ;;  %964 = vmatpush3.bf16.msra.mxu1 %v1073_v33  ;;  %v1081_v37 = vld [vmem:[#allocation8] sm:$0xff]   ;;  %v1078_v40 = vld [vmem:[#allocation9 + $0x10] sm:$0xff]   ;;  %v1079_v41 = vld [vmem:[#allocation9 + $0x8] sm:$0xff]  }
 0x147   : > { %926 = vmatprep.subr.bf16.mxu0 %v1074_v34  ;;  %957 = vmatprep.subr.bf16.mxu1 %v1074_v34  ;;  %v1080_v42 = vld [vmem:[#allocation9] sm:$0xff]   ;;  %v1083_v43 = vld [vmem:[#allocation8 + $0x8] sm:$0xff]   ;;  %v1084_v44 = vld [vmem:[#allocation8 + $0x18] sm:$0xff]  }
 0x148   : > { %940 = vmatprep.mubr.bf16.mxu0 %v1081_v37  ;;  %944 = vmatprep.mubr.bf16.mxu1 %v1082_v38  ;;  %v513_v45 = vld [vmem:[#allocation2 + $0x18] sm:$0xff]  ;;  %v869_v46 = vld [vmem:[%s1526_s4] ss:$0 sm:$0xff]  ;;  %v517_v47 = vld [vmem:[#allocation2 + $0x28] sm:$0xff] }
 0x149   : > { %v511_v48 = vld [vmem:[#allocation2 + $0x30] sm:$0xff]  ;;  %v515_v49 = vld [vmem:[#allocation2 + $0x8] sm:$0xff]  ;;  %v528_v50 = vadd.f32 %v869_v46, %v513_v45  ;;  %v532_v51 = vadd.f32 %v869_v46, %v517_v47  ;;  %v518_v53 = vld [vmem:[#allocation2 + $0x38] sm:$0xff] }
 0x14a   : > { %927 = vmatpush3.bf16.msra.mxu0 %v1074_v34  ;;  %965 = vmatpush3.bf16.msra.mxu1 %v1074_v34  ;;  %v514_v52 = vld [vmem:[#allocation2 + $0x10] sm:$0xff]  ;;  %v526_v54 = vadd.f32 %v869_v46, %v511_v48  ;;  %v530_v55 = vadd.f32 %v869_v46, %v515_v49  ;;  %v512_v56 = vld [vmem:[#allocation2] sm:$0xff]  ;;  %v533_v63 = vadd.f32 %v869_v46, %v518_v53 }
 0x14b   : > { %928 = vmatprep.subr.bf16.mxu0 %v1075_v35  ;;  %958 = vmatprep.subr.bf16.mxu1 %v1075_v35  ;;  %v516_v57 = vld [vmem:[#allocation2 + $0x20] sm:$0xff]  ;;  %v529_v62 = vadd.f32 %v869_v46, %v514_v52  ;;  %v527_v2 = vadd.f32 %v869_v46, %v512_v56 }
 0x14c   : > { %v531_v3 = vadd.f32 %v869_v46, %v516_v57 }
 0x14e   : > { %929 = vmatpush3.bf16.msra.mxu0 %v1075_v35  ;;  %966 = vmatpush3.bf16.msra.mxu1 %v1075_v35 }
 0x14f   : > { %930 = vmatprep.subr.bf16.mxu0 %v1076_v36  ;;  %959 = vmatprep.subr.bf16.mxu1 %v1076_v36 }
 0x152   : > { %931 = vmatpush3.bf16.msra.mxu0 %v1076_v36  ;;  %967 = vmatpush3.bf16.msra.mxu1 %v1076_v36 }
 0x153   : > { %932 = vmatprep.subr.bf16.mxu0 %v1077_v39  ;;  %960 = vmatprep.subr.bf16.mxu1 %v1077_v39 }
 0x156   : > { %933 = vmatpush3.bf16.msra.mxu0 %v1077_v39  ;;  %968 = vmatpush3.bf16.msra.mxu1 %v1077_v39 }
 0x157   : > { %934 = vmatprep.subr.bf16.mxu0 %v1078_v40  ;;  %961 = vmatprep.subr.bf16.mxu1 %v1078_v40 }
 0x15a   : > { %935 = vmatpush3.bf16.msra.mxu0 %v1078_v40  ;;  %969 = vmatpush3.bf16.msra.mxu1 %v1078_v40 }
 0x15b   : > { %936 = vmatprep.subr.bf16.mxu0 %v1079_v41  ;;  %962 = vmatprep.subr.bf16.mxu1 %v1079_v41 }
 0x15e   : > { %937 = vmatpush3.bf16.msra.mxu0 %v1079_v41  ;;  %970 = vmatpush3.bf16.msra.mxu1 %v1079_v41 }
 0x15f   : > { %938 = vmatprep.subr.bf16.mxu0 %v1080_v42  ;;  %963 = vmatprep.subr.bf16.mxu1 %v1080_v42 }
 0x162   : > { %939 = vmatpush3.bf16.msra.mxu0 %v1080_v42  ;;  %971 = vmatpush3.bf16.msra.mxu1 %v1080_v42 }
 0x165   : > { %941 = vmatmul.mubr.bf16.vlgmr.msra.gmra.mxu0 %v1083_v43  ;;  %945 = vmatmul.mubr.bf16.vlgmr.msra.gmra.mxu1 %v1084_v44 }
 0x225   : > { %v942_v58 = vpop.f32.mrf.mxu0  ;;  %v946_v59 = vpop.f32.mrf.mxu1 }
 0x226   : > { %v697_v60 = vadd.f32 %v942_v58, %v528_v50  ;;  %v701_v61 = vadd.f32 %v946_v59, %v532_v51 }
 0x227   : > { %v664_v0 = vpop.f32.mrf.mxu0  ;;  %v680_v1 = vpop.f32.mrf.mxu1 }
 0x228   : > { %v705_v4 = vmax.f32 %v697_v60, 0.0  ;;  %v709_v5 = vmax.f32 %v701_v61, 0.0  ;;  %v695_v6 = vadd.f32 %v664_v0, %v526_v54  ;;  %v699_v7 = vadd.f32 %v680_v1, %v530_v55 }
 0x229   : > { %v943_v8 = vpop.f32.mrf.mxu0  ;;  %v947_v9 = vpop.f32.mrf.mxu1 }
 0x22a   : > { %713 = vst [vmem:[#allocation11 + $0x10] sm:$0xff] %v705_v4  ;;  %717 = vst [vmem:[#allocation11 + $0x30] sm:$0xff] %v709_v5  ;;  %v703_v10 = vmax.f32 %v695_v6, 0.0  ;;  %v707_v11 = vmax.f32 %v699_v7, 0.0  ;;  %v698_v12 = vadd.f32 %v943_v8, %v529_v62  ;;  %v702_v13 = vadd.f32 %v947_v9, %v533_v63 }
 0x22b   : > { %v667_v14 = vpop.f32.mrf.mxu0  ;;  %v683_v15 = vpop.f32.mrf.mxu1 }
 0x22c   : > { %711 = vst [vmem:[#allocation11] sm:$0xff] %v703_v10  ;;  %715 = vst [vmem:[#allocation11 + $0x20] sm:$0xff] %v707_v11  ;;  %v706_v16 = vmax.f32 %v698_v12, 0.0  ;;  %v710_v17 = vmax.f32 %v702_v13, 0.0  ;;  %v696_v18 = vadd.f32 %v667_v14, %v527_v2  ;;  %v700_v19 = vadd.f32 %v683_v15, %v531_v3 }
 0x22e   : > { %714 = vst [vmem:[#allocation11 + $0x18] sm:$0xff] %v706_v16  ;;  %718 = vst [vmem:[#allocation11 + $0x38] sm:$0xff] %v710_v17  ;;  %v704_v20 = vmax.f32 %v696_v18, 0.0  ;;  %v708_v21 = vmax.f32 %v700_v19, 0.0 }
 0x230   : > { %712 = vst [vmem:[#allocation11 + $0x8] sm:$0xff] %v704_v20  ;;  %716 = vst [vmem:[#allocation11 + $0x28] sm:$0xff] %v708_v21 }
 0x231 PF: > { %p1007_p4 = scmp.eq.s32.totalorder %s1354_s24, 3  ;;  %s1292_s26 = smov [#allocation11]  }
 0x232   : > { %s728_s18 = sshll.u32 %s1292_s26, 4  ;;  %s729_s18 = int_to_ptr.vmem [resolvable:$true] %s728_s18 }
 0x233   : > { %s1193_s17 = scalar_lea.vmem %s729_s18, 1024  ;;  %p1200_p3 = scmp.lt.s32.totalorder %s729_s18, %s729_s18 }
 0x234   : > { %p1194_p7 = scmp.ne.s32.totalorder %s729_s18, %s1193_s17  ;;  %p1201_p6 = scmp.lt.s32.totalorder %s1193_s17, %s1193_s17 }
 0x236   : > { %p1195_p10 = pnand %p1194_p7, %p1007_p4  ;;  %p1202_p9 = por %p1201_p6, %p1200_p3 }
 0x238   : > { %p1196_p2 = pneg %p1195_p10 }
 0x23a   : > { %p1203_p11 = pnand %p1202_p9, %p1196_p2 }
 0x23c   : > { %1206 = shalt.err (!%p1203_p11)
}
 0x23d   : > { %s1293_s27 = smov 128   ;;  %s1294_s28 = smov 8  }
 0x23e   : > { %985 = dma.vmem_to_hbm [thread:$0]  (%p1007_p4), %s729_s18, 1024, %s1527_s5, [#allocation5], %s1293_s27, %s1293_s27, %s1294_s28  }
 0x23f   : > { %1258 = dma.done.wait (%p1007_p4), [#allocation5], 1024  }
 0x240   : > { %1260 = vsyncadd (%p1007_p4), [#allocation5], 4294966272 }
 0x241 PF: > { %s23_s23 = sadd.s32 1, %s1283_s23   ;;  %s1540_s18 = smov %s1267_s19 }
 0x242   : > { %p20_p12 = scmp.ge.s32.totalorder %s23_s23, 6   ;;  %s1541_s19 = smov %s1271_s20 }
 0x243   : > { %s1542_s20 = smov %s1415_s29  ;;  %s1543_s21 = smov %s1279_s22 }
 0x244   : > { %s1544_s22 = smov %s1546_s15  ;;  %22 = sbr.rel (!%p20_p12) target bundleno = 10 (0xa), region = 108 }
 0x249   :  { %744 = vsyncpa [#allocation4], 1 }
 0x24a   :  { %746 = vsyncpa [#allocation4 + $0x1], 1 }
 0x24b   :  { %747 = vsyncpa [#allocation7], 1 }
 0x24c   :  { %749 = vsyncpa [#allocation7 + $0x1], 1 }
 0x24d   :  { %750 = vsyncpa [#allocation10], 1 }
 0x24e   :  { %751 = vsyncpa [#allocation5], 1 }
 0x24f   :  { %753 = vsyncpa [#allocation5 + $0x1], 1 }

</bundles_post_ra>
